<compile_context>
chip_gen: v7x
topology: tpu7x:2x2x1
jax: 0.10.0
libtpu: 0.0.40
codegen_flags: <defaults>
</compile_context>

<pallas_src>
import jax
import jax.numpy as jnp
from jax import lax
from jax.experimental import pallas as pl
from jax.experimental.pallas import tpu as pltpu

_SUB = 8      # f32 sublane quantum
_LANE = 128   # lane quantum


def _round_up(x, m):
    return (x + m - 1) // m * m


def _tile_partials(score_ref, tp_ref, tg_ref, out_shape):
    """Partial sums for one score tile, packed into an (..., 8, 128) block.

    sublane 0 (lane 0): sum(max(log t, -100))          == -(S_pos + S_neg)
    sublane 1 (lane 0): sum(mask ? max(log t,-100) : 0) == -S_pos
    sublane 2 (lane 0): count((score > 0.5) == mask)
    """
    s = score_ref[...].astype(jnp.float32)            # (tm, tn)
    mask = tp_ref[...] == tg_ref[...]                 # (1,tn) == (tm,1) -> (tm,tn)
    # torch.nn.BCELoss clamps each log at -100; since the target is 0/1 only one
    # log term survives per element -> a single EUP log per element.
    t = jnp.where(mask, s, 1.0 - s)
    lt = jnp.maximum(jnp.log(t), -100.0)               # negation folded into wrapper
    log_all = jnp.sum(lt)
    log_pos = jnp.sum(jnp.where(mask, lt, 0.0))
    correct = jnp.sum(((s > 0.5) == mask).astype(jnp.float32))
    sub = lax.broadcasted_iota(jnp.int32, out_shape, len(out_shape) - 2)
    return (jnp.where(sub == 0, log_all, 0.0)
            + jnp.where(sub == 1, log_pos, 0.0)
            + jnp.where(sub == 2, correct, 0.0))


def _strip_kernel(score_ref, tp_ref, tg_ref, part_ref):
    """1-D grid: one full (padded-width) row strip per grid step."""
    part_ref[...] = _tile_partials(score_ref, tp_ref, tg_ref, part_ref.shape)


def _tile_kernel(score_ref, tp_ref, tg_ref, part_ref):
    """2-D fallback: accumulate across the column (reduction) axis."""
    @pl.when(pl.program_id(1) == 0)
    def _init():
        part_ref[...] = jnp.zeros_like(part_ref)

    part_ref[...] += _tile_partials(score_ref, tp_ref, tg_ref, part_ref.shape)


def pair_loss(score, tar_probe, tar_gallery, sampling_rate=3,
              row_tile=512, col_tile=2048, tile_vmem_bytes=4 * 1024 * 1024):
    """Pallas-backed PairLoss.forward. Returns (loss, prec) scalars."""
    n_p, n_g = score.shape
    # The PyTorch expand() only works when N_probe == N_gallery.
    assert n_p == n_g, "PairLoss assumes a square score matrix (N_probe == N_gallery)"
    n = n_p

    in_bytes = jnp.dtype(score.dtype).itemsize
    budget_elems = max(_SUB * _LANE, tile_vmem_bytes // max(in_bytes, 1))

    # ---- row-strip height (multiple of 8, >=2 strips when rows allow) ----
    pm8 = _round_up(n, _SUB)
    tm = min(_round_up(min(row_tile, pm8), _SUB), pm8)
    if pm8 // tm < 2 and pm8 >= 16 * _SUB:
        # Encourage >=2 row strips so v7x's two TensorCores both get work.
        tm = _round_up(pl.cdiv(pm8, 2), _SUB)

    # ---- column extent: full-row strips when they fit the VMEM budget ----
    pn_full = _round_up(n, _LANE)
    if tm * pn_full <= budget_elems:
        one_d, tn = True, pn_full
    else:
        tm_fit = (budget_elems // pn_full) // _SUB * _SUB
        if tm_fit >= _SUB:
            one_d, tm, tn = True, min(tm, tm_fit), pn_full
        else:
            one_d, tn = False, max(_LANE, (col_tile // _LANE) * _LANE)

    pm = _round_up(n, tm)
    pn = _round_up(n, tn)
    n_row_tiles = pm // tm
    n_col_tiles = pn // tn

    tp = tar_probe.reshape(1, n).astype(jnp.int32)      # column-varying (probe)
    tg = tar_gallery.reshape(n, 1).astype(jnp.int32)    # row-varying (gallery)

    if pm > n or pn > n:
        # Padded score entries are 0 and their labels are sentinels strictly
        # below any real label (and unequal to each other), so mask=False,
        # t = 1, log t = 0: zero contribution to both loss partials.  They do
        # add exactly (pm*pn - n*n) to `correct` (0 > 0.5 is False == False),
        # which is subtracted below.
        label_min = jnp.minimum(jnp.min(tp), jnp.min(tg))
        score = jnp.pad(score, ((0, pm - n), (0, pn - n)))
        if pn > n:
            tp = jnp.concatenate(
                [tp, jnp.full((1, pn - n), label_min - 1, jnp.int32)], axis=1)
        if pm > n:
            tg = jnp.concatenate(
                [tg, jnp.full((pm - n, 1), label_min - 2, jnp.int32)], axis=0)

    tile_bytes = tm * tn * in_bytes
    cost = pl.CostEstimate(
        flops=11 * pm * pn,
        transcendentals=pm * pn,
        bytes_accessed=in_bytes * pm * pn + 4 * (pm + pn)
        + 4 * n_row_tiles * _SUB * _LANE,
    )
    compiler_params = pltpu.CompilerParams(
        dimension_semantics=(("parallel",) if one_d
                             else ("parallel", "arbitrary")),
        # Explicit scoped-VMEM budget: double-buffered score tile + headroom,
        # sized to fit v7x's 64 MiB VMEM and above v5e's 16 MiB default scope.
        vmem_limit_bytes=int(max(32 * 1024 * 1024, 4 * tile_bytes)),
    )
    # TODO(synk): on v7x, if profiling shows one TensorCore idle, switch the row
    # axis to pltpu.CORE_PARALLEL (or an explicit leading size-2 grid axis).

    if one_d:
        grid_spec = pltpu.PrefetchScalarGridSpec(
            num_scalar_prefetch=0,
            grid=(n_row_tiles,),
            in_specs=[
                pl.BlockSpec((tm, tn), lambda i: (i, 0)),   # full-width strip
                pl.BlockSpec((1, tn), lambda i: (0, 0)),    # probe labels
                pl.BlockSpec((tm, 1), lambda i: (i, 0)),    # gallery labels
            ],
            out_specs=pl.BlockSpec((1, _SUB, _LANE), lambda i: (i, 0, 0)),
        )
        kernel = _strip_kernel
    else:
        grid_spec = pltpu.PrefetchScalarGridSpec(
            num_scalar_prefetch=0,
            grid=(n_row_tiles, n_col_tiles),
            in_specs=[
                pl.BlockSpec((tm, tn), lambda i, j: (i, j)),
                pl.BlockSpec((1, tn), lambda i, j: (0, j)),
                pl.BlockSpec((tm, 1), lambda i, j: (i, 0)),
            ],
            out_specs=pl.BlockSpec((1, _SUB, _LANE), lambda i, j: (i, 0, 0)),
        )
        kernel = _tile_kernel

    partials = pl.pallas_call(
        kernel,
        grid_spec=grid_spec,
        out_shape=jax.ShapeDtypeStruct((n_row_tiles, _SUB, _LANE), jnp.float32),
        compiler_params=compiler_params,
        cost_estimate=cost,
    )(score, tp, tg)

    # ---- tiny final reduction + scalar algebra (outside the kernel) ----
    log_all = jnp.sum(partials[:, 0, 0])        # = -(S_pos + S_neg)
    log_pos = jnp.sum(partials[:, 1, 0])        # = -S_pos
    # Per-strip correct counts are exact integers in f32; finish exactly in i32.
    correct = (jnp.sum(partials[:, 2, 0].astype(jnp.int32))
               - jnp.int32(pm * pn - n * n))

    s_pos = -log_pos
    s_neg = -log_all + log_pos

    # Exact positive-pair count from the label vectors (no per-element work in
    # the kernel): for each probe label, count equal gallery labels.
    tg_sorted = jnp.sort(tar_gallery.astype(jnp.int32))
    tp_flat = tar_probe.astype(jnp.int32)
    pos_cnt = (jnp.searchsorted(tg_sorted, tp_flat, side="right")
               - jnp.searchsorted(tg_sorted, tp_flat, side="left"))
    pos_sum = jnp.sum(pos_cnt).astype(jnp.float32)

    total = jnp.float32(n * n)
    neg_sum = total - pos_sum
    # Same failure modes as the PyTorch original when pos_sum==0 or neg_sum==0.
    neg_rel = pos_sum / neg_sum * jnp.float32(sampling_rate)
    weight_sum = pos_sum + neg_rel * neg_sum            # sum(weights) before /10
    loss = (s_pos + neg_rel * s_neg) / (weight_sum * 10.0)
    prec = correct.astype(jnp.float32) / total
    return loss, prec


def _pair_loss_ref(score, tar_probe, tar_gallery, sampling_rate=3):
    """Pure-JAX reference mirroring the PyTorch forward (for sanity checking)."""
    n_p, n_g = score.shape
    score = score.astype(jnp.float32)
    mask = (tar_probe[None, :] == tar_gallery[:, None]).astype(jnp.float32)
    pos_sum = jnp.sum(mask)
    neg_sum = jnp.float32(n_p * n_g) - pos_sum
    neg_rel = pos_sum / neg_sum * sampling_rate
    w = mask + (1.0 - mask) * neg_rel
    w = w / jnp.sum(w) / 10.0
    bce = -(mask * jnp.maximum(jnp.log(score), -100.0)
            + (1.0 - mask) * jnp.maximum(jnp.log(1.0 - score), -100.0))
    loss = jnp.sum(w * bce)
    prec = jnp.mean(((score > 0.5).astype(jnp.float32) == mask).astype(jnp.float32))
    return loss, prec


def _check(loss, prec, ref_loss, ref_prec, tag):
    assert jnp.allclose(loss, ref_loss, rtol=1e-4, atol=1e-5), (tag, loss, ref_loss)
    assert jnp.allclose(prec, ref_prec, rtol=1e-4, atol=1e-5), (tag, prec, ref_prec)


if __name__ == "__main__":
    key = jax.random.PRNGKey(0)

    def make_case(key, n, n_classes):
        k1, k2, k3 = jax.random.split(key, 3)
        s = jax.random.uniform(k1, (n, n), jnp.float32, minval=0.01, maxval=0.99)
        tp = jax.random.randint(k2, (n,), 0, n_classes, dtype=jnp.int32)
        tg = jax.random.randint(k3, (n,), 0, n_classes, dtype=jnp.int32)
        return s, tp, tg

    # --- test 1: small, single row strip (column padding 16 -> 128 only) ---
    key, sub = jax.random.split(key)
    s1, tp1, tg1 = make_case(sub, 16, 4)
    loss1, prec1 = pair_loss(s1, tp1, tg1, sampling_rate=3)
    jax.block_until_ready((loss1, prec1))
    _check(loss1, prec1, *_pair_loss_ref(s1, tp1, tg1, sampling_rate=3), tag="t1")

    # --- test 2: default tiles, auto-split into 2 row strips (v7x sharding) ---
    key, sub = jax.random.split(key)
    s2, tp2, tg2 = make_case(sub, 320, 8)
    loss2, prec2 = pair_loss(s2, tp2, tg2, sampling_rate=3)
    jax.block_until_ready((loss2, prec2))
    _check(loss2, prec2, *_pair_loss_ref(s2, tp2, tg2, sampling_rate=3), tag="t2")

    # --- test 3: 1-D multi-strip path with row + column padding (grid (3,)) ---
    key, sub = jax.random.split(key)
    s3, tp3, tg3 = make_case(sub, 160, 8)
    loss3, prec3 = pair_loss(s3, tp3, tg3, sampling_rate=3, row_tile=64)
    jax.block_until_ready((loss3, prec3))
    _check(loss3, prec3, *_pair_loss_ref(s3, tp3, tg3, sampling_rate=3), tag="t3")

    # --- test 4: force the 2-D column-reduction fallback (grid (3, 2)) ---
    loss4, prec4 = pair_loss(s3, tp3, tg3, sampling_rate=3,
                             row_tile=64, col_tile=128, tile_vmem_bytes=4096)
    jax.block_until_ready((loss4, prec4))
    _check(loss4, prec4, *_pair_loss_ref(s3, tp3, tg3, sampling_rate=3), tag="t4")

    print("KERNEL_OK")
</pallas_src>

<mosaic_0001>
module attributes {stable_mosaic.version = 11 : i64} {
  func.func @_strip_kernel(%arg0: i32, %arg1: memref<16x128xf32, #tpu.memory_space<vmem>>, %arg2: memref<1x128xi32, #tpu.memory_space<vmem>>, %arg3: memref<16x1xi32, #tpu.memory_space<vmem>>, %arg4: memref<1x8x128xf32, #tpu.memory_space<vmem>>) attributes {dimension_semantics = [#tpu.dimension_semantics<parallel>], iteration_bounds = array<i64: 1>, scalar_prefetch = 0 : i64, scratch_operands = 0 : i64, tpu.core_type = #tpu.core_type<tc>, window_params = [{transform_indices = @transform_0, window_bounds = array<i64: 16, 128>}, {pipeline_mode = #tpu.pipeline_mode<synchronous>, transform_indices = @transform_1, window_bounds = array<i64: 1, 128>}, {transform_indices = @transform_2, window_bounds = array<i64: 16, 1>}, {transform_indices = @transform_3, window_bounds = array<i64: 1, 8, 128>}]} {
    %c0 = arith.constant 0 : index
    %c0_0 = arith.constant 0 : index
    %0 = vector.load %arg1[%c0, %c0_0] : memref<16x128xf32, #tpu.memory_space<vmem>>, vector<16x128xf32>
    %c0_1 = arith.constant 0 : index
    %c0_2 = arith.constant 0 : index
    %1 = vector.load %arg2[%c0_1, %c0_2] : memref<1x128xi32, #tpu.memory_space<vmem>>, vector<1x128xi32>
    %c0_3 = arith.constant 0 : index
    %c0_4 = arith.constant 0 : index
    %2 = vector.load %arg3[%c0_3, %c0_4] : memref<16x1xi32, #tpu.memory_space<vmem>>, vector<16x1xi32>
    %3 = vector.broadcast %1 : vector<1x128xi32> to vector<16x128xi32>
    %4 = vector.broadcast %2 : vector<16x1xi32> to vector<16x128xi32>
    %5 = arith.cmpi eq, %3, %4 : vector<16x128xi32>
    %cst = arith.constant 1.000000e+00 : f32
    %6 = vector.broadcast %cst : f32 to vector<16x128xf32>
    %7 = arith.subf %6, %0 : vector<16x128xf32>
    %8 = arith.select %5, %0, %7 : vector<16x128xi1>, vector<16x128xf32>
    %9 = math.log %8 : vector<16x128xf32>
    %cst_5 = arith.constant -1.000000e+02 : f32
    %10 = vector.broadcast %cst_5 : f32 to vector<16x128xf32>
    %11 = arith.maximumf %9, %10 : vector<16x128xf32>
    %12 = vector.shape_cast %11 : vector<16x128xf32> to vector<1x16x128xf32>
    %cst_6 = arith.constant dense<0.000000e+00> : vector<1xf32>
    %13 = vector.multi_reduction <add>, %12, %cst_6 [1, 2] : vector<1x16x128xf32> to vector<1xf32>
    %14 = vector.shape_cast %13 : vector<1xf32> to vector<1x1x1xf32>
    %15 = vector.extract %14[0, 0, 0] : f32 from vector<1x1x1xf32>
    %cst_7 = arith.constant 0.000000e+00 : f32
    %16 = vector.broadcast %cst_7 : f32 to vector<16x128xf32>
    %17 = arith.select %5, %11, %16 : vector<16x128xi1>, vector<16x128xf32>
    %18 = vector.shape_cast %17 : vector<16x128xf32> to vector<1x16x128xf32>
    %cst_8 = arith.constant dense<0.000000e+00> : vector<1xf32>
    %19 = vector.multi_reduction <add>, %18, %cst_8 [1, 2] : vector<1x16x128xf32> to vector<1xf32>
    %20 = vector.shape_cast %19 : vector<1xf32> to vector<1x1x1xf32>
    %21 = vector.extract %20[0, 0, 0] : f32 from vector<1x1x1xf32>
    %cst_9 = arith.constant 5.000000e-01 : f32
    %22 = vector.broadcast %cst_9 : f32 to vector<16x128xf32>
    %23 = arith.cmpf ogt, %0, %22 : vector<16x128xf32>
    %24 = arith.xori %23, %5 : vector<16x128xi1>
    %cst_10 = arith.constant dense<true> : vector<16x128xi1>
    %25 = arith.xori %24, %cst_10 : vector<16x128xi1>
    %26 = arith.extui %25 : vector<16x128xi1> to vector<16x128xi32>
    %27 = arith.sitofp %26 : vector<16x128xi32> to vector<16x128xf32>
    %28 = vector.shape_cast %27 : vector<16x128xf32> to vector<1x16x128xf32>
    %cst_11 = arith.constant dense<0.000000e+00> : vector<1xf32>
    %29 = vector.multi_reduction <add>, %28, %cst_11 [1, 2] : vector<1x16x128xf32> to vector<1xf32>
    %30 = vector.shape_cast %29 : vector<1xf32> to vector<1x1x1xf32>
    %31 = vector.extract %30[0, 0, 0] : f32 from vector<1x1x1xf32>
    %32 = tpu.iota {dimensions = array<i32: 1>} : vector<1x8x128xi32>
    %c0_i32 = arith.constant 0 : i32
    %33 = vector.broadcast %c0_i32 : i32 to vector<1x8x128xi32>
    %34 = arith.cmpi eq, %32, %33 : vector<1x8x128xi32>
    %cst_12 = arith.constant 0.000000e+00 : f32
    %35 = vector.broadcast %15 : f32 to vector<1x8x128xf32>
    %36 = vector.broadcast %cst_12 : f32 to vector<1x8x128xf32>
    %37 = arith.select %34, %35, %36 : vector<1x8x128xi1>, vector<1x8x128xf32>
    %c1_i32 = arith.constant 1 : i32
    %38 = vector.broadcast %c1_i32 : i32 to vector<1x8x128xi32>
    %39 = arith.cmpi eq, %32, %38 : vector<1x8x128xi32>
    %cst_13 = arith.constant 0.000000e+00 : f32
    %40 = vector.broadcast %21 : f32 to vector<1x8x128xf32>
    %41 = vector.broadcast %cst_13 : f32 to vector<1x8x128xf32>
    %42 = arith.select %39, %40, %41 : vector<1x8x128xi1>, vector<1x8x128xf32>
    %43 = arith.addf %37, %42 : vector<1x8x128xf32>
    %c2_i32 = arith.constant 2 : i32
    %44 = vector.broadcast %c2_i32 : i32 to vector<1x8x128xi32>
    %45 = arith.cmpi eq, %32, %44 : vector<1x8x128xi32>
    %cst_14 = arith.constant 0.000000e+00 : f32
    %46 = vector.broadcast %31 : f32 to vector<1x8x128xf32>
    %47 = vector.broadcast %cst_14 : f32 to vector<1x8x128xf32>
    %48 = arith.select %45, %46, %47 : vector<1x8x128xi1>, vector<1x8x128xf32>
    %49 = arith.addf %43, %48 : vector<1x8x128xf32>
    %c0_15 = arith.constant 0 : index
    %c0_16 = arith.constant 0 : index
    %c0_17 = arith.constant 0 : index
    %50 = vector.load %arg4[%c0_15, %c0_16, %c0_17] : memref<1x8x128xf32, #tpu.memory_space<vmem>>, vector<1x8x128xf32>
    tpu.vector_store %arg4[%c0_15, %c0_16, %c0_17], %49 {strides = array<i32>} : memref<1x8x128xf32, #tpu.memory_space<vmem>>, vector<1x8x128xf32>,
    return
  }
  func.func @transform_0(%arg0: i32) -> (i32, i32) {
    %c0_i32 = arith.constant 0 : i32
    %c0_i32_0 = arith.constant 0 : i32
    return %arg0, %c0_i32 : i32, i32
  }
  func.func @transform_1(%arg0: i32) -> (i32, i32) {
    %c0_i32 = arith.constant 0 : i32
    %c0_i32_0 = arith.constant 0 : i32
    %c0_i32_1 = arith.constant 0 : i32
    return %c0_i32, %c0_i32_0 : i32, i32
  }
  func.func @transform_2(%arg0: i32) -> (i32, i32) {
    %c0_i32 = arith.constant 0 : i32
    %c0_i32_0 = arith.constant 0 : i32
    return %arg0, %c0_i32 : i32, i32
  }
  func.func @transform_3(%arg0: i32) -> (i32, i32, i32) {
    %c0_i32 = arith.constant 0 : i32
    %c0_i32_0 = arith.constant 0 : i32
    %c0_i32_1 = arith.constant 0 : i32
    return %arg0, %c0_i32, %c0_i32_0 : i32, i32, i32
  }
}

</mosaic_0001>

<bundles_post_ra>
// kernel: tpu_custom_call.1
= control target key start
LH: loop header
LB: loop body
LE: loop exit
PB: predicated region body
PF: predicated region fallthrough
CT: control target
= control target key end

     0   :  { %v154_v1 = vmov 0   ;;  %s211_s0 = inlined_call_operand.vmem [shape: f32[16,128], index: 0, kind: input, shape index: {}]   ;;  %s212_s1 = inlined_call_operand.vmem [shape: s32[1,128], index: 1, kind: input, shape index: {}]   ;;  %s213_s2 = inlined_call_operand.vmem [shape: s32[16,1], index: 2, kind: input, shape index: {}]   ;;  %s214_s3 = inlined_call_operand.hbm [shape: f32[1,8,128], index: 3, kind: output, shape index: {}]  }
   0x1   :  { %v18_v0 = vld [vmem:[%s213_s2] sm:$0xff]  ;;  %125 = vset.pattern.permute.xlu0 %v154_v1 }
   0x2   :  { %8 = vsyncpa [#allocation3], 0  ;;  %25 = vperm.xlu0 %125, %v18_v0   ;;  %v19_v2 = vld [vmem:[%s213_s2 + $0x8] sm:$0xff]  ;;  %v15_v3 = vld [vmem:[%s211_s0] sm:$0xff]  ;;  %vm155_vm5 = vmmov 1   ;;  %v156_v12 = vmov 0.0   ;;  %v84_v47 = vlaneseq }
   0x3   :  { %v112_v4 = vld [vmem:[%s212_s1] ss:$0 sm:$0xff]  ;;  %v32_v5 = vsub.f32 1.0, %v15_v3  ;;  %vm64_vm0 = vcmp.gt.f32.partialorder %v15_v3, 0.5  ;;  %v16_v6 = vld [vmem:[%s211_s0 + $0x8] sm:$0xff]  ;;  %s157_s22 = smov [#allocation2]  }
   0x4   :  { %v33_v9 = vsub.f32 1.0, %v16_v6  ;;  %vm65_vm3 = vcmp.gt.f32.partialorder %v16_v6, 0.5  ;;  %v85_v48 = vshrl.u32 %v84_v47, 7  ;;  %s104_s23 = sshll.u32 %s157_s22, 4  ;;  %s105_s23 = int_to_ptr.vmem [resolvable:$true] %s104_s23 }
   0x5   :  { %s130_s24 = scalar_lea.vmem %s105_s23, 128  ;;  %p135_p1 = scmp.lt.s32.totalorder %s105_s23, %s105_s23 }
   0x6   :  { %28 = vperm.xlu0 %125, %v19_v2   ;;  %vm86_vm9 = vcmp.eq.s32.totalorder %v85_v48, 0  ;;  %vm89_vm10 = vcmp.eq.s32.totalorder %v85_v48, 1  ;;  %vm93_vm11 = vcmp.eq.s32.totalorder %v85_v48, 2  ;;  %p131_p0 = scmp.ne.s32.totalorder %s105_s23, %s130_s24  ;;  %p136_p2 = scmp.lt.s32.totalorder %s130_s24, %s130_s24 }
   0x8   :  { %p137_p3 = por %p136_p2, %p135_p1 }
   0xa   :  { %p138_p4 = pnand %p137_p3, %p131_p0 }
  0x81   :  { %v26_v7 = vpop.permute.xlu0 %25 }
  0x82   :  { %vm30_vm1 = vcmp.eq.s32.totalorder %v112_v4, %v26_v7 }
  0x83   :  { %v34_v8 = vsel %vm30_vm1, %v15_v3, %v32_v5  ;;  %vm66_vm2 = vmxor %vm64_vm0, %vm30_vm1 }
  0x84   :  { %126 = vlog2.f32 %v34_v8  ;;  %vm68_vm6 = vmxor %vm66_vm2, %vm155_vm5 }
  0x85   :  { %v29_v10 = vpop.permute.xlu0 %28  ;;  %v113_v13 = vsel %vm68_vm6, 1.0, %v156_v12 }
  0x86   :  { %vm31_vm4 = vcmp.eq.s32.totalorder %v112_v4, %v29_v10 }
  0x87   :  { %v35_v11 = vsel %vm31_vm4, %v16_v6, %v33_v9  ;;  %vm67_vm7 = vmxor %vm65_vm3, %vm31_vm4 }
  0x88   :  { %128 = vlog2.f32 %v35_v11  ;;  %vm69_vm8 = vmxor %vm67_vm7, %vm155_vm5 }
  0x89   :  { %v114_v14 = vsel %vm69_vm8, 1.0, %v156_v12 }
  0x8a   :  { %v74_v15 = vadd.f32 %v114_v14, %v113_v13 }
  0x8c   :  { %75 = vadd.xlane.f32.xlu0 %v74_v15 }
  0x8e   :  { %v127_v16 = vpop.eup %126 }
  0x8f   :  { %v37_v17 = vmul.f32 0.6931472, %v127_v16 }
  0x91   :  { %v40_v20 = vmax.f32 %v37_v17, -100.0 }
  0x92   :  { %v129_v18 = vpop.eup %128 }
  0x93   :  { %v39_v19 = vmul.f32 0.6931472, %v129_v18  ;;  %v52_v24 = vsel %vm30_vm1, %v40_v20, 0.0 }
  0x95   :  { %v41_v21 = vmax.f32 %v39_v19, -100.0 }
  0x97   :  { %v42_v22 = vadd.f32 %v41_v21, %v40_v20  ;;  %v53_v23 = vsel %vm31_vm4, %v41_v21, 0.0 }
  0x98   :  { %v54_v25 = vadd.f32 %v53_v23, %v52_v24 }
  0x99   :  { %43 = vadd.xlane.f32.xlu1 %v42_v22 }
  0x9d   :  { %55 = vadd.xlane.f32.xlu1 %v54_v25 }
 0x119   :  { %v76_v26 = vpop.xlane.xlu0 %75 }
 0x11a   :  { %v77_v27 = vrot.slane %v76_v26, 4 }
 0x11c   :  { %v78_v28 = vadd.f32 %v77_v27, %v76_v26 }
 0x11e   :  { %v79_v32 = vrot.slane %v78_v28, 2 }
 0x120   :  { %v80_v38 = vadd.f32 %v79_v32, %v78_v28 }
 0x122   :  { %v81_v43 = vrot.slane %v80_v38, 1 }
 0x124   :  { %v82_v46 = vadd.f32 %v81_v43, %v80_v38 }
 0x126   :  { %v44_v29 = vpop.xlane.xlu1 %43 }
 0x127   :  { %v45_v30 = vrot.slane %v44_v29, 4 }
 0x129   :  { %v46_v31 = vadd.f32 %v45_v30, %v44_v29 }
 0x12a   :  { %v56_v33 = vpop.xlane.xlu1 %55 }
 0x12b   :  { %v47_v34 = vrot.slane %v46_v31, 2  ;;  %v57_v35 = vrot.slane %v56_v33, 4 }
 0x12d   :  { %v58_v36 = vadd.f32 %v57_v35, %v56_v33  ;;  %v48_v37 = vadd.f32 %v47_v34, %v46_v31 }
 0x12f   :  { %v59_v39 = vrot.slane %v58_v36, 2  ;;  %v49_v40 = vrot.slane %v48_v37, 1 }
 0x131   :  { %v60_v41 = vadd.f32 %v59_v39, %v58_v36  ;;  %v50_v42 = vadd.f32 %v49_v40, %v48_v37 }
 0x133   :  { %115 = vpush %v50_v42  ;;  %v61_v44 = vrot.slane %v60_v41, 1 }
 0x135   :  { %v62_v45 = vadd.f32 %v61_v44, %v60_v41 }
 0x137   :  { %117 = vpush %v62_v45 }
 0x138   :  { %119 = vpush %v82_v46 }
 0x164   :  { %s116_s0 = spop %115 }
 0x165   :  { %v87_v49 = vstv %s116_s0 }
 0x166   :  { %v88_v51 = vsel %vm86_vm9, %v87_v49, 0.0 }
 0x168   :  { %s118_s1 = spop %117 }
 0x169   :  { %v90_v50 = vstv %s118_s1  ;;  %s120_s2 = spop %119 }
 0x16a   :  { %v91_v52 = vsel %vm89_vm10, %v90_v50, 0.0  ;;  %v94_v53 = vstv %s120_s2 }
 0x16b   :  { %v92_v54 = vadd.f32 %v91_v52, %v88_v51  ;;  %v95_v55 = vsel %vm93_vm11, %v94_v53, 0.0 }
 0x16d   :  { %v96_v56 = vadd.f32 %v95_v55, %v92_v54 }
 0x16f   :  { %97 = vst [vmem:[#allocation2] sm:$0xff] %v96_v56 }
 0x170   :  { %141 = shalt.err (!%p138_p4)
}
 0x171   :  { %s142_s27 = scalar_lea.hbm %s214_s3, 128 }
 0x172   :  { %p143_p5 = scmp.ne.s32.totalorder %s214_s3, %s142_s27  ;;  %p146_p6 = scmp.lt.u32.totalorder %s142_s27, %s214_s3 }
 0x174   :  { %p148_p7 = pnand %p146_p6, %p143_p5 }
 0x176   :  { %151 = shalt.err (!%p148_p7)
}
 0x177   :  { %107 = dma.vmem_to_hbm [thread:$0]  %s105_s23, 128, %s214_s3, [#allocation3]  }
 0x178   :  { %152 = dma.done.wait [#allocation3], 128  }
 0x179   :  { %153 = vsyncadd [#allocation3], 4294967168 }
 0x17a   :  { %111 = vsyncpa [#allocation3], 1 }

</bundles_post_ra>
